<compile_context>
chip_gen: v7x
topology: tpu7x:2x2x1
jax: 0.10.0
libtpu: 0.0.40
codegen_flags: <defaults>
</compile_context>

<pallas_src>
import jax
import jax.numpy as jnp
from jax.experimental import pallas as pl
from jax.experimental.pallas import tpu as pltpu


def _graph_readout_kernel(lo_ref, hi_ref,                 # scalar prefetch (SMEM)
                          mem_row_ref, mem_col_ref, x_ref,
                          wt_max_ref, wt_sum_ref, bias_ref,
                          out_ref,
                          max_acc, sum_acc, cnt_acc):
    """Grid axis = node tiles (reduction).  Accumulate per-graph max/sum/count
    into VMEM scratch, then do one split merge matmul + one output store."""
    t = pl.program_id(0)
    B = sum_acc.shape[0]

    @pl.when(t == 0)
    def _():
        max_acc[...] = jnp.full(max_acc.shape, -jnp.inf, max_acc.dtype)
        sum_acc[...] = jnp.zeros(sum_acc.shape, sum_acc.dtype)
        cnt_acc[...] = jnp.zeros(cnt_acc.shape, cnt_acc.dtype)

    x = x_ref[...]                               # (tile_n, F_pad), native dtype
    xf = x.astype(jnp.float32)
    mem_row = mem_row_ref[...]                   # (1, tile_n) int32 (lane-dense)
    mem_col = mem_col_ref[...]                   # (tile_n, 1) int32 (sublane)
    tile_n = x.shape[0]

    # ---- sum readout on the MXU: one-hot(membership) @ x -------------------
    gids = jax.lax.broadcasted_iota(jnp.int32, (B, tile_n), 0)
    onehot = gids == mem_row                                  # (B, tile_n) bool
    sum_acc[...] += jnp.dot(onehot.astype(x.dtype), x,
                            preferred_element_type=jnp.float32)
    # per-graph node counts (f32 is exact for realistic node counts)
    cnt_acc[...] += jnp.sum(onehot.astype(jnp.float32), axis=1, keepdims=True)

    # ---- max readout: 2-D masked reduce, only over graphs present in tile --
    lo = lo_ref[t]
    hi = hi_ref[t]

    def body(b, carry):
        mask = mem_col == b                                   # (tile_n, 1) bool
        row_max = jnp.max(jnp.where(mask, xf, -jnp.inf),
                          axis=0, keepdims=True)              # (1, F_pad)
        cur = max_acc[pl.ds(b, 1), :]
        max_acc[pl.ds(b, 1), :] = jnp.maximum(cur, row_max)
        return carry

    jax.lax.fori_loop(lo, hi, body, 0)

    # ---- finalize: split merge Linear(2F -> F), single lane-dense store ----
    @pl.when(t == pl.num_programs(0) - 1)
    def _():
        seen = cnt_acc[...] > 0.0                             # (B, 1)
        x_max = jnp.where(seen, max_acc[...], 0.0)            # empty graph -> 0
        out = (jnp.dot(x_max, wt_max_ref[...], preferred_element_type=jnp.float32)
               + jnp.dot(sum_acc[...], wt_sum_ref[...],
                         preferred_element_type=jnp.float32)
               + bias_ref[...])
        out_ref[...] = out.astype(out_ref.dtype)


def _round_up(a, m):
    return (a + m - 1) // m * m


def _vmem_capacity_bytes():
    try:
        cap = getattr(pltpu.get_tpu_info(), "vmem_capacity_bytes", None)
        if cap:
            return int(cap)
    except Exception:
        pass
    return 64 << 20        # v7x-safe fallback


def graph_readout(x, membership, w_merge, b_merge, num_graphs, max_tile_n=None):
    """x: (N, F) float, membership: (N,) int, w_merge: (F, 2F), b_merge: (F,)."""
    N, F = x.shape
    B = int(num_graphs)
    x_esize = jnp.dtype(x.dtype).itemsize

    # lane-dense feature dim
    F_pad = _round_up(max(F, 128), 128)

    # ---- VMEM budget / node-tile size (adaptive per generation) ------------
    vmem_cap = _vmem_capacity_bytes()
    vmem_limit = max(min(vmem_cap - (16 << 20), 96 << 20), 32 << 20)
    resident = (2 * 2 * F_pad * F_pad * 4        # two (F,F) weight halves, dbl-buffered
                + 3 * B * F_pad * 4              # max/sum accumulators + out block
                + B * 128 * 4 + 2 * F_pad * 4)   # count accumulator, bias
    budget = max(vmem_limit - resident - (2 << 20), 2 << 20)

    def _tile_bytes(tn):    # x tile + both membership layouts (lane/sublane padded)
        return tn * F_pad * x_esize + tn * 128 * 4 + 8 * tn * 4

    tile_n = 2048 if max_tile_n is None else int(max_tile_n)
    while tile_n > 128 and 2 * _tile_bytes(tile_n) > budget:
        tile_n //= 2
    n8 = _round_up(N, 8)
    if n8 <= tile_n:
        tile_n = n8                                # tiny N: single grid step
    n_pad = _round_up(N, tile_n)
    num_tiles = n_pad // tile_n
    pad_n = n_pad - N

    # ---- host-side padding / layout plumbing (native x dtype kept) ---------
    x_p = jnp.pad(x, ((0, pad_n), (0, F_pad - F)))
    mem = membership.astype(jnp.int32)
    mem_p = jnp.pad(mem, (0, pad_n), constant_values=-1)       # pad rows match no graph
    mem_row = mem_p.reshape(1, n_pad)                          # lane-dense layout
    mem_col = mem_p.reshape(n_pad, 1)                          # sublane layout

    # merge Linear(2F -> F): weight split into max / sum halves, pre-transposed.
    w32 = w_merge.astype(jnp.float32)
    wt_max = jnp.pad(w32[:, :F].T, ((0, F_pad - F), (0, F_pad - F)))
    wt_sum = jnp.pad(w32[:, F:].T, ((0, F_pad - F), (0, F_pad - F)))
    bias2d = jnp.pad(b_merge.astype(jnp.float32).reshape(1, F),
                     ((0, 0), (0, F_pad - F)))

    # per-tile graph-id range [lo, hi): tight for sorted / PyG-style batching,
    # still correct (just wider) for arbitrary membership orderings.
    mem_tiles = mem_p.reshape(num_tiles, tile_n)
    valid = mem_tiles >= 0
    tile_lo = jnp.min(jnp.where(valid, mem_tiles, B), axis=1)
    tile_hi = jnp.max(jnp.where(valid, mem_tiles, -1), axis=1) + 1
    tile_lo = jnp.clip(tile_lo, 0, B).astype(jnp.int32)
    tile_hi = jnp.clip(tile_hi, 0, B).astype(jnp.int32)
    tile_lo = jnp.minimum(tile_lo, tile_hi)

    out = pl.pallas_call(
        _graph_readout_kernel,
        out_shape=jax.ShapeDtypeStruct((B, F_pad), jnp.float32),
        grid_spec=pltpu.PrefetchScalarGridSpec(
            num_scalar_prefetch=2,
            grid=(num_tiles,),
            in_specs=[
                pl.BlockSpec((1, tile_n), lambda t, lo, hi: (0, t)),       # membership (row)
                pl.BlockSpec((tile_n, 1), lambda t, lo, hi: (t, 0)),       # membership (col)
                pl.BlockSpec((tile_n, F_pad), lambda t, lo, hi: (t, 0)),   # node features
                pl.BlockSpec((F_pad, F_pad), lambda t, lo, hi: (0, 0)),    # W_max^T (resident)
                pl.BlockSpec((F_pad, F_pad), lambda t, lo, hi: (0, 0)),    # W_sum^T (resident)
                pl.BlockSpec((1, F_pad), lambda t, lo, hi: (0, 0)),        # bias (resident)
            ],
            out_specs=pl.BlockSpec((B, F_pad), lambda t, lo, hi: (0, 0)),  # written at finalize
            scratch_shapes=[
                pltpu.VMEM((B, F_pad), jnp.float32),    # running max
                pltpu.VMEM((B, F_pad), jnp.float32),    # running sum
                pltpu.VMEM((B, 1), jnp.float32),        # per-graph node counts
            ],
        ),
        compiler_params=pltpu.CompilerParams(
            dimension_semantics=("arbitrary",),          # reduction over node tiles
            vmem_limit_bytes=int(vmem_limit),
        ),
    )(tile_lo, tile_hi, mem_row, mem_col, x_p, wt_max, wt_sum, bias2d)

    return out[:, :F]


def _reference(x, membership, w_merge, b_merge, B):
    """Plain-JAX reference mirroring the PyTorch forward (max + sum, cat, Linear).
    Empty graphs produce 0 rows (same convention as the kernel)."""
    xf = x.astype(jnp.float32)
    counts = jax.ops.segment_sum(jnp.ones((xf.shape[0],), jnp.float32),
                                 membership, num_segments=B)
    x_max = jax.ops.segment_max(xf, membership, num_segments=B)
    x_max = jnp.where((counts > 0)[:, None], x_max, 0.0)
    x_sum = jax.ops.segment_sum(xf, membership, num_segments=B)
    cat = jnp.concatenate([x_max, x_sum], axis=-1)
    return cat @ w_merge.astype(jnp.float32).T + b_merge.astype(jnp.float32)


if __name__ == "__main__":
    key = jax.random.PRNGKey(0)
    k_x, k_w, k_b, k_x2, k_m2 = jax.random.split(key, 5)

    # ---- case 1: tiny batch, single node tile (N=16, F=32, B=4) ------------
    N, F, B = 16, 32, 4
    x = jax.random.normal(k_x, (N, F), dtype=jnp.float32)
    membership = jnp.array([0, 0, 0, 0, 1, 1, 1, 2, 2, 2, 2, 2, 3, 3, 3, 3],
                           dtype=jnp.int32)

    # deterministic merge_layer (nn.Linear(2F, F)) params, PyTorch-style init
    bound = 1.0 / jnp.sqrt(jnp.float32(2 * F))
    w_merge = jax.random.uniform(k_w, (F, 2 * F), jnp.float32, -bound, bound)
    b_merge = jax.random.uniform(k_b, (F,), jnp.float32, -bound, bound)

    out = jax.block_until_ready(graph_readout(x, membership, w_merge, b_merge, B))
    ref = _reference(x, membership, w_merge, b_merge, B)
    assert out.shape == (B, F)
    assert jnp.allclose(out, ref, atol=1e-4, rtol=1e-4), "case 1 mismatch vs reference"

    # ---- case 2: multi-tile grid, sorted (PyG-style) membership, empty graph
    N2, B2 = 300, 6
    x2 = jax.random.normal(k_x2, (N2, F), dtype=jnp.float32)
    mem2 = jnp.sort(jax.random.randint(k_m2, (N2,), 0, B2 - 1)).astype(jnp.int32)
    out2 = jax.block_until_ready(
        graph_readout(x2, mem2, w_merge, b_merge, B2, max_tile_n=128))
    ref2 = _reference(x2, mem2, w_merge, b_merge, B2)
    assert out2.shape == (B2, F)
    assert jnp.allclose(out2, ref2, atol=1e-3, rtol=1e-3), "case 2 mismatch vs reference"

    print("KERNEL_OK")
</pallas_src>

<mosaic_0001>
module attributes {stable_mosaic.version = 11 : i64} {
  func.func @_graph_readout_kernel(%arg0: i32, %arg1: memref<1xi32, #tpu.memory_space<smem>>, %arg2: memref<1xi32, #tpu.memory_space<smem>>, %arg3: memref<1x16xi32, #tpu.memory_space<vmem>>, %arg4: memref<16x1xi32, #tpu.memory_space<vmem>>, %arg5: memref<16x128xf32, #tpu.memory_space<vmem>>, %arg6: memref<128x128xf32, #tpu.memory_space<vmem>>, %arg7: memref<128x128xf32, #tpu.memory_space<vmem>>, %arg8: memref<1x128xf32, #tpu.memory_space<vmem>>, %arg9: memref<4x128xf32, #tpu.memory_space<vmem>>, %arg10: memref<4x128xf32, #tpu.memory_space<vmem>>, %arg11: memref<4x128xf32, #tpu.memory_space<vmem>>, %arg12: memref<4x1xf32, #tpu.memory_space<vmem>>) attributes {dimension_semantics = [#tpu.dimension_semantics<arbitrary>], iteration_bounds = array<i64: 1>, scalar_prefetch = 2 : i64, scratch_operands = 3 : i64, tpu.core_type = #tpu.core_type<tc>, window_params = [{transform_indices = @transform_0, window_bounds = array<i64: 1, 16>}, {transform_indices = @transform_1, window_bounds = array<i64: 16, 1>}, {transform_indices = @transform_2, window_bounds = array<i64: 16, 128>}, {pipeline_mode = #tpu.pipeline_mode<synchronous>, transform_indices = @transform_3, window_bounds = array<i64: 128, 128>}, {pipeline_mode = #tpu.pipeline_mode<synchronous>, transform_indices = @transform_4, window_bounds = array<i64: 128, 128>}, {pipeline_mode = #tpu.pipeline_mode<synchronous>, transform_indices = @transform_5, window_bounds = array<i64: 1, 128>}, {pipeline_mode = #tpu.pipeline_mode<synchronous>, transform_indices = @transform_6, window_bounds = array<i64: 4, 128>}]} {
    %c0_i32 = arith.constant 0 : i32
    %0 = arith.cmpi eq, %arg0, %c0_i32 : i32
    %1 = arith.extui %0 : i1 to i32
    %c0_i32_0 = arith.constant 0 : i32
    %2 = arith.cmpi ne, %1, %c0_i32_0 : i32
    scf.if %2 {
      %cst_18 = arith.constant 0xFF800000 : f32
      %31 = vector.broadcast %cst_18 : f32 to vector<4x128xf32>
      %c0_19 = arith.constant 0 : index
      %c0_20 = arith.constant 0 : index
      %32 = vector.load %arg10[%c0_19, %c0_20] : memref<4x128xf32, #tpu.memory_space<vmem>>, vector<4x128xf32>
      tpu.vector_store %arg10[%c0_19, %c0_20], %31 {strides = array<i32>} : memref<4x128xf32, #tpu.memory_space<vmem>>, vector<4x128xf32>,
      %cst_21 = arith.constant 0.000000e+00 : f32
      %33 = vector.broadcast %cst_21 : f32 to vector<4x128xf32>
      %c0_22 = arith.constant 0 : index
      %c0_23 = arith.constant 0 : index
      %34 = vector.load %arg11[%c0_22, %c0_23] : memref<4x128xf32, #tpu.memory_space<vmem>>, vector<4x128xf32>
      tpu.vector_store %arg11[%c0_22, %c0_23], %33 {strides = array<i32>} : memref<4x128xf32, #tpu.memory_space<vmem>>, vector<4x128xf32>,
      %cst_24 = arith.constant 0.000000e+00 : f32
      %35 = vector.broadcast %cst_24 : f32 to vector<4x1xf32>
      %c0_25 = arith.constant 0 : index
      %c0_26 = arith.constant 0 : index
      %36 = vector.load %arg12[%c0_25, %c0_26] : memref<4x1xf32, #tpu.memory_space<vmem>>, vector<4x1xf32>
      tpu.vector_store %arg12[%c0_25, %c0_26], %35 {strides = array<i32>} : memref<4x1xf32, #tpu.memory_space<vmem>>, vector<4x1xf32>,
    } else {
    }
    %c0 = arith.constant 0 : index
    %c0_1 = arith.constant 0 : index
    %3 = vector.load %arg5[%c0, %c0_1] : memref<16x128xf32, #tpu.memory_space<vmem>>, vector<16x128xf32>
    %c0_2 = arith.constant 0 : index
    %c0_3 = arith.constant 0 : index
    %4 = vector.load %arg3[%c0_2, %c0_3] : memref<1x16xi32, #tpu.memory_space<vmem>>, vector<1x16xi32>
    %c0_4 = arith.constant 0 : index
    %c0_5 = arith.constant 0 : index
    %5 = vector.load %arg4[%c0_4, %c0_5] : memref<16x1xi32, #tpu.memory_space<vmem>>, vector<16x1xi32>
    %6 = tpu.iota {dimensions = array<i32: 0>} : vector<4x16xi32>
    %7 = vector.broadcast %4 : vector<1x16xi32> to vector<4x16xi32>
    %8 = arith.cmpi eq, %6, %7 : vector<4x16xi32>
    %c0_6 = arith.constant 0 : index
    %c0_7 = arith.constant 0 : index
    %9 = vector.load %arg11[%c0_6, %c0_7] : memref<4x128xf32, #tpu.memory_space<vmem>>, vector<4x128xf32>
    %10 = arith.extui %8 : vector<4x16xi1> to vector<4x16xi32>
    %11 = arith.sitofp %10 : vector<4x16xi32> to vector<4x16xf32>
    %cst = arith.constant dense<0.000000e+00> : vector<4x128xf32>
    %12 = tpu.matmul %11, %3, %cst {dimension_numbers = #tpu.dot_dimension_numbers<[1], [0], [0], [1], [0, 0, 1, 1], [], []>} : vector<4x16xf32>, vector<16x128xf32>, vector<4x128xf32> -> vector<4x128xf32>
    %13 = arith.addf %9, %12 : vector<4x128xf32>
    %c0_8 = arith.constant 0 : index
    %c0_9 = arith.constant 0 : index
    %14 = vector.load %arg11[%c0_8, %c0_9] : memref<4x128xf32, #tpu.memory_space<vmem>>, vector<4x128xf32>
    tpu.vector_store %arg11[%c0_8, %c0_9], %13 {strides = array<i32>} : memref<4x128xf32, #tpu.memory_space<vmem>>, vector<4x128xf32>,
    %c0_10 = arith.constant 0 : index
    %c0_11 = arith.constant 0 : index
    %15 = vector.load %arg12[%c0_10, %c0_11] : memref<4x1xf32, #tpu.memory_space<vmem>>, vector<4x1xf32>
    %16 = arith.extui %8 : vector<4x16xi1> to vector<4x16xi32>
    %17 = arith.sitofp %16 : vector<4x16xi32> to vector<4x16xf32>
    %cst_12 = arith.constant dense<0.000000e+00> : vector<4xf32>
    %18 = vector.multi_reduction <add>, %17, %cst_12 [1] : vector<4x16xf32> to vector<4xf32>
    %19 = vector.shape_cast %18 : vector<4xf32> to vector<4x1xf32>
    %20 = arith.addf %15, %19 : vector<4x1xf32>
    %c0_13 = arith.constant 0 : index
    %c0_14 = arith.constant 0 : index
    %21 = vector.load %arg12[%c0_13, %c0_14] : memref<4x1xf32, #tpu.memory_space<vmem>>, vector<4x1xf32>
    tpu.vector_store %arg12[%c0_13, %c0_14], %20 {strides = array<i32>} : memref<4x1xf32, #tpu.memory_space<vmem>>, vector<4x1xf32>,
    %22 = arith.index_cast %arg0 : i32 to index
    %23 = memref.load %arg1[%22] : memref<1xi32, #tpu.memory_space<smem>>
    %24 = arith.index_cast %arg0 : i32 to index
    %25 = memref.load %arg2[%24] : memref<1xi32, #tpu.memory_space<smem>>
    %c0_i32_15 = arith.constant 0 : i32
    %26 = arith.subi %25, %23 : i32
    %27 = arith.addi %23, %26 : i32
    %c1_i32 = arith.constant 1 : i32
    scf.for %arg13 = %23 to %27 step %c1_i32  : i32 {
      %31 = vector.broadcast %arg13 : i32 to vector<16x1xi32>
      %32 = arith.cmpi eq, %5, %31 : vector<16x1xi32>
      %cst_18 = arith.constant 0xFF800000 : f32
      %33 = vector.shape_cast %32 : vector<16x1xi1> to vector<16x1xi1>
      %34 = vector.broadcast %33 : vector<16x1xi1> to vector<16x128xi1>
      %35 = vector.broadcast %cst_18 : f32 to vector<16x128xf32>
      %36 = arith.select %34, %3, %35 : vector<16x128xi1>, vector<16x128xf32>
      %cst_19 = arith.constant dense<0xFF800000> : vector<128xf32>
      %37 = vector.multi_reduction <maximumf>, %36, %cst_19 [0] : vector<16x128xf32> to vector<128xf32>
      %38 = vector.shape_cast %37 : vector<128xf32> to vector<1x128xf32>
      %39 = arith.index_cast %arg13 : i32 to index
      %c0_20 = arith.constant 0 : index
      %40 = vector.load %arg10[%39, %c0_20] : memref<4x128xf32, #tpu.memory_space<vmem>>, vector<1x128xf32>
      %41 = arith.maximumf %40, %38 : vector<1x128xf32>
      %42 = arith.index_cast %arg13 : i32 to index
      %c0_21 = arith.constant 0 : index
      %43 = vector.load %arg10[%42, %c0_21] : memref<4x128xf32, #tpu.memory_space<vmem>>, vector<1x128xf32>
      tpu.vector_store %arg10[%42, %c0_21], %41 {strides = array<i32>} : memref<4x128xf32, #tpu.memory_space<vmem>>, vector<1x128xf32>,
    }
    %c0_i32_16 = arith.constant 0 : i32
    %28 = arith.cmpi eq, %arg0, %c0_i32_16 : i32
    %29 = arith.extui %28 : i1 to i32
    %c0_i32_17 = arith.constant 0 : i32
    %30 = arith.cmpi ne, %29, %c0_i32_17 : i32
    scf.if %30 {
      %c0_18 = arith.constant 0 : index
      %c0_19 = arith.constant 0 : index
      %31 = vector.load %arg12[%c0_18, %c0_19] : memref<4x1xf32, #tpu.memory_space<vmem>>, vector<4x1xf32>
      %cst_20 = arith.constant 0.000000e+00 : f32
      %32 = vector.broadcast %cst_20 : f32 to vector<4x1xf32>
      %33 = arith.cmpf ogt, %31, %32 : vector<4x1xf32>
      %c0_21 = arith.constant 0 : index
      %c0_22 = arith.constant 0 : index
      %34 = vector.load %arg10[%c0_21, %c0_22] : memref<4x128xf32, #tpu.memory_space<vmem>>, vector<4x128xf32>
      %cst_23 = arith.constant 0.000000e+00 : f32
      %35 = vector.shape_cast %33 : vector<4x1xi1> to vector<4x1xi1>
      %36 = vector.broadcast %35 : vector<4x1xi1> to vector<4x128xi1>
      %37 = vector.broadcast %cst_23 : f32 to vector<4x128xf32>
      %38 = arith.select %36, %34, %37 : vector<4x128xi1>, vector<4x128xf32>
      %c0_24 = arith.constant 0 : index
      %c0_25 = arith.constant 0 : index
      %39 = vector.load %arg6[%c0_24, %c0_25] : memref<128x128xf32, #tpu.memory_space<vmem>>, vector<128x128xf32>
      %cst_26 = arith.constant dense<0.000000e+00> : vector<4x128xf32>
      %40 = tpu.matmul %38, %39, %cst_26 {dimension_numbers = #tpu.dot_dimension_numbers<[1], [0], [0], [1], [0, 0, 1, 1], [], []>} : vector<4x128xf32>, vector<128x128xf32>, vector<4x128xf32> -> vector<4x128xf32>
      %c0_27 = arith.constant 0 : index
      %c0_28 = arith.constant 0 : index
      %41 = vector.load %arg11[%c0_27, %c0_28] : memref<4x128xf32, #tpu.memory_space<vmem>>, vector<4x128xf32>
      %c0_29 = arith.constant 0 : index
      %c0_30 = arith.constant 0 : index
      %42 = vector.load %arg7[%c0_29, %c0_30] : memref<128x128xf32, #tpu.memory_space<vmem>>, vector<128x128xf32>
      %cst_31 = arith.constant dense<0.000000e+00> : vector<4x128xf32>
      %43 = tpu.matmul %41, %42, %cst_31 {dimension_numbers = #tpu.dot_dimension_numbers<[1], [0], [0], [1], [0, 0, 1, 1], [], []>} : vector<4x128xf32>, vector<128x128xf32>, vector<4x128xf32> -> vector<4x128xf32>
      %44 = arith.addf %40, %43 : vector<4x128xf32>
      %c0_32 = arith.constant 0 : index
      %c0_33 = arith.constant 0 : index
      %45 = vector.load %arg8[%c0_32, %c0_33] : memref<1x128xf32, #tpu.memory_space<vmem>>, vector<1x128xf32>
      %46 = vector.broadcast %45 : vector<1x128xf32> to vector<4x128xf32>
      %47 = arith.addf %44, %46 : vector<4x128xf32>
      %c0_34 = arith.constant 0 : index
      %c0_35 = arith.constant 0 : index
      %48 = vector.load %arg9[%c0_34, %c0_35] : memref<4x128xf32, #tpu.memory_space<vmem>>, vector<4x128xf32>
      tpu.vector_store %arg9[%c0_34, %c0_35], %47 {strides = array<i32>} : memref<4x128xf32, #tpu.memory_space<vmem>>, vector<4x128xf32>,
    } else {
    }
    return
  }
  func.func @transform_0(%arg0: i32, %arg1: memref<1xi32, #tpu.memory_space<smem>>, %arg2: memref<1xi32, #tpu.memory_space<smem>>) -> (i32, i32) {
    %c0_i32 = arith.constant 0 : i32
    %c0_i32_0 = arith.constant 0 : i32
    return %c0_i32, %arg0 : i32, i32
  }
  func.func @transform_1(%arg0: i32, %arg1: memref<1xi32, #tpu.memory_space<smem>>, %arg2: memref<1xi32, #tpu.memory_space<smem>>) -> (i32, i32) {
    %c0_i32 = arith.constant 0 : i32
    %c0_i32_0 = arith.constant 0 : i32
    return %arg0, %c0_i32 : i32, i32
  }
  func.func @transform_2(%arg0: i32, %arg1: memref<1xi32, #tpu.memory_space<smem>>, %arg2: memref<1xi32, #tpu.memory_space<smem>>) -> (i32, i32) {
    %c0_i32 = arith.constant 0 : i32
    %c0_i32_0 = arith.constant 0 : i32
    return %arg0, %c0_i32 : i32, i32
  }
  func.func @transform_3(%arg0: i32, %arg1: memref<1xi32, #tpu.memory_space<smem>>, %arg2: memref<1xi32, #tpu.memory_space<smem>>) -> (i32, i32) {
    %c0_i32 = arith.constant 0 : i32
    %c0_i32_0 = arith.constant 0 : i32
    %c0_i32_1 = arith.constant 0 : i32
    return %c0_i32, %c0_i32_0 : i32, i32
  }
  func.func @transform_4(%arg0: i32, %arg1: memref<1xi32, #tpu.memory_space<smem>>, %arg2: memref<1xi32, #tpu.memory_space<smem>>) -> (i32, i32) {
    %c0_i32 = arith.constant 0 : i32
    %c0_i32_0 = arith.constant 0 : i32
    %c0_i32_1 = arith.constant 0 : i32
    return %c0_i32, %c0_i32_0 : i32, i32
  }
  func.func @transform_5(%arg0: i32, %arg1: memref<1xi32, #tpu.memory_space<smem>>, %arg2: memref<1xi32, #tpu.memory_space<smem>>) -> (i32, i32) {
    %c0_i32 = arith.constant 0 : i32
    %c0_i32_0 = arith.constant 0 : i32
    %c0_i32_1 = arith.constant 0 : i32
    return %c0_i32, %c0_i32_0 : i32, i32
  }
  func.func @transform_6(%arg0: i32, %arg1: memref<1xi32, #tpu.memory_space<smem>>, %arg2: memref<1xi32, #tpu.memory_space<smem>>) -> (i32, i32) {
    %c0_i32 = arith.constant 0 : i32
    %c0_i32_0 = arith.constant 0 : i32
    %c0_i32_1 = arith.constant 0 : i32
    return %c0_i32, %c0_i32_0 : i32, i32
  }
}

</mosaic_0001>

<bundles_post_ra>
// kernel: tpu_custom_call.1
= control target key start
LH: loop header
LB: loop body
LE: loop exit
PB: predicated region body
PF: predicated region fallthrough
CT: control target
= control target key end

     0   :  { %15 = vsyncpa [#allocation9], 0  ;;  %s844_s0 = inlined_call_operand.<no memory space> [shape: s32[1], index: 0, kind: input, shape index: {}]   ;;  %s845_s1 = inlined_call_operand.<no memory space> [shape: s32[1], index: 1, kind: input, shape index: {}]   ;;  %s846_s2 = inlined_call_operand.vmem [shape: s32[1,16], index: 2, kind: input, shape index: {}]   ;;  %s847_s3 = inlined_call_operand.vmem [shape: s32[16,1], index: 3, kind: input, shape index: {}]   ;;  %s848_s4 = inlined_call_operand.vmem [shape: f32[16,128], index: 4, kind: input, shape index: {}]   ;;  %s849_s5 = inlined_call_operand.hbm [shape: f32[128,128], index: 5, kind: input, shape index: {}]   ;;  %s850_s6 = inlined_call_operand.hbm [shape: f32[128,128], index: 6, kind: input, shape index: {}]   ;;  %s851_s7 = inlined_call_operand.vmem [shape: f32[1,128], index: 7, kind: input, shape index: {}]   ;;  %s852_s8 = inlined_call_operand.hbm [shape: f32[4,128], index: 8, kind: output, shape index: {}]  }
   0x1   :  { %16 = vsyncpa [#allocation12], 0 }
   0x2   :  { %17 = vsyncpa [#allocation10], 0  ;;  %s684_s27 = smov [#allocation8]   ;;  %s604_s9 = scalar_lea.hbm %s849_s5, 2048 }
   0x3   :  { %s29_s28 = sshll.u32 %s684_s27, 4  ;;  %p605_p0 = scmp.ne.s32.totalorder %s849_s5, %s604_s9  ;;  %s30_s28 = int_to_ptr.vmem [resolvable:$true] %s29_s28 }
   0x4   :  { %p608_p1 = scmp.lt.u32.totalorder %s604_s9, %s849_s5 }
   0x6   :  { %p610_p2 = pnand %p608_p1, %p605_p0 }
   0x8   :  { %613 = shalt.err (!%p610_p2)
}
   0x9   :  { %s614_s14 = scalar_lea.vmem %s30_s28, 2048  ;;  %p619_p4 = scmp.lt.s32.totalorder %s30_s28, %s30_s28 }
   0xa   :  { %p615_p3 = scmp.ne.s32.totalorder %s30_s28, %s614_s14  ;;  %p620_p5 = scmp.lt.s32.totalorder %s614_s14, %s614_s14 }
   0xc   :  { %p621_p6 = por %p620_p5, %p619_p4 }
   0xe   :  { %p622_p7 = pnand %p621_p6, %p615_p3 }
  0x10   :  { %625 = shalt.err (!%p622_p7)
}
  0x11   :  { %s685_s15 = smov 128   ;;  %s686_s16 = smov 8  }
  0x12   :  { %35 = dma.hbm_to_vmem [thread:$0]  %s849_s5, 2048, %s30_s28, [#allocation9], %s685_s15, %s685_s15, %s686_s16  }
  0x13   :  { %s687_s19 = smov [#allocation11]   ;;  %s626_s23 = scalar_lea.hbm %s850_s6, 2048 }
  0x14   :  { %s41_s20 = sshll.u32 %s687_s19, 4  ;;  %p627_p8 = scmp.ne.s32.totalorder %s850_s6, %s626_s23  ;;  %s42_s20 = int_to_ptr.vmem [resolvable:$true] %s41_s20 }
  0x15   :  { %p630_p9 = scmp.lt.u32.totalorder %s626_s23, %s850_s6 }
  0x17   :  { %p632_p10 = pnand %p630_p9, %p627_p8 }
  0x19   :  { %635 = shalt.err (!%p632_p10)
}
  0x1a   :  { %s636_s29 = scalar_lea.vmem %s42_s20, 2048  ;;  %p641_p12 = scmp.lt.s32.totalorder %s42_s20, %s42_s20 }
  0x1b   :  { %p637_p11 = scmp.ne.s32.totalorder %s42_s20, %s636_s29  ;;  %p642_p13 = scmp.lt.s32.totalorder %s636_s29, %s636_s29 }
  0x1d   :  { %p643_p0 = por %p642_p13, %p641_p12 }
  0x1f   :  { %p644_p1 = pnand %p643_p0, %p637_p11 }
  0x21   :  { %647 = shalt.err (!%p644_p1)
}
  0x22   :  { %47 = dma.hbm_to_vmem [thread:$0]  %s850_s6, 2048, %s42_s20, [#allocation12], %s685_s15, %s685_s15, %s686_s16  }
  0x23   :  { %674 = dma.done.wait [#allocation9], 2048  }
  0x24   :  { %675 = vsyncadd [#allocation9], 4294965248 }
  0x25   :  { %676 = dma.done.wait [#allocation12], 2048  }
  0x26   :  { %677 = vsyncadd [#allocation12], 4294965248  ;;  %vm62_vm0 = vcmask 3072   ;;  %v688_v0 = vmov -inf   ;;  %v689_v1 = vmov 0.0|0.0   ;;  %v690_v2 = vmov 0.0   ;;  %p409_p2 = scmp.ge.s32.totalorder %s844_s0, %s845_s1 }
  0x27   :  { %60 = vst [vmem:[#allocation2] sm:$0xf] %v688_v0  ;;  %532 = vmatprep.subr.bf16.mxu0 %v689_v1  ;;  %61 = vst [vmem:[#allocation3] sm:$0xf] %v690_v2  ;;  %v69_v3 = vlaneseq  ;;  %vm691_vm1 = vmmov 0   ;;  %v67_v5 = vld [vmem:[%s847_s3] sm:$0xff] }
  0x28   :  { %63 = vst.msk [vmem:[#allocation4] sm:$0xf] %vm62_vm0, %v690_v2  ;;  %459 = vmatprep.mubr.msk.f32.mxu0 %vm691_vm1, %v690_v2  ;;  %v68_v6 = vld [vmem:[%s847_s3 + $0x8] sm:$0xff]  ;;  %v64_v7 = vld [vmem:[%s848_s4] sm:$0xff]  ;;  %vm156_vm2 = vcmask 125952   ;;  %vm79_vm4 = vcmask 130048  }
  0x29   :  { %v70_v4 = vshrl.u32 %v69_v3, 7  ;;  %v65_v8 = vld [vmem:[%s848_s4 + $0x8] sm:$0xff]  ;;  %v413_v9 = vld [vmem:[%s846_s2] ss:$0 sm:$0xff] }
  0x2a   :  { %v533_v10 = vpack.c.bf16 %v65_v8, %v64_v7 }
  0x2b   :  { %vm75_vm3 = vcmp.eq.s32.totalorder %v70_v4, %v413_v9 }
  0x2c   :  { %v414_v11 = vsel %vm75_vm3, 1.0, %v690_v2  ;;  %534 = vmatpush3.bf16.msra.mxu0 %v533_v10 }
  0x2d   :  { %v157_v12 = vsel %vm156_vm2, %v414_v11, 0.0 }
  0x2e   :  { %158 = vadd.xlane.f32.xlu0 %v157_v12  ;;  %v76_v16 = vld [vmem:[#allocation3] sm:$0xf] }
  0x2f   :  { %460 = vmatmul.mubr.msk.f32.vlgmr.msra.gmra.mrb[0].mxu0 %vm79_vm4, %v414_v11  ;;  %v155_v13 = vld [vmem:[#allocation4] sm:$0xf] }
  0xbb   :  { %v159_v14 = vpop.xlane.xlu0 %158 }
  0xbc   :  { %v160_v15 = vadd.f32 %v159_v14, %v155_v13 }
  0xbe   :  { %162 = vst.msk [vmem:[#allocation4] sm:$0xf] %vm62_vm0, %v160_v15 }
  0xff   :  { %410 = sbr.rel (%p409_p2) target bundleno = 416 (0x1a0), region = 62 }
 0x102   :  { %v149_v17 = vpop.f32.mrb[0].mxu0 }
 0x103   :  { %v153_v18 = vadd.f32 %v149_v17, %v76_v16  ;;  %v461_v19 = vpop.f32.mrb[1].mxu0 }
 0x105   :  { %154 = vst [vmem:[#allocation3] sm:$0xf] %v153_v18 }
 0x106 LB: > { %v692_v20 = vmov 0   ;;  %v171_v21 = vstv %s682_s0  ;;  %s193_s20 = scalar_lea.vmem [#allocation2], %s682_s0  ;;  %s168_s0 = sadd.s32 1, %s682_s0   ;;  %s682_s0 = sphi %s844_s0, %s168_s0  }
 0x107   : > { %602 = vset.pattern.permute.xlu0 %v692_v20  ;;  %vm172_vm5 = vcmp.eq.s32.totalorder %v67_v5, %v171_v21  ;;  %vm173_vm6 = vcmp.eq.s32.totalorder %v68_v6, %v171_v21  ;;  %v194_v34 = vld [vmem:[%s193_s20] sm:$0x1]  ;;  %p167_p3 = scmp.ge.s32.totalorder %s168_s0, %s845_s1 }
 0x108   : > { %v174_v22 = vsel %vm172_vm5, 1, %v692_v20  ;;  %v175_v23 = vsel %vm173_vm6, 1, %v692_v20 }
 0x109   : > { %177 = vperm.xlu0 %602, %v174_v22  }
 0x10d   : > { %180 = vperm.xlu0 %602, %v175_v23  }
 0x188   : > { %v178_v24 = vpop.permute.xlu0 %177 }
 0x189   : > { %vm182_vm7 = vcmp.eq.s32.totalorder %v178_v24, 1 }
 0x18a   : > { %v184_v26 = vsel %vm182_vm7, %v64_v7, -inf }
 0x18c   : > { %v181_v25 = vpop.permute.xlu0 %180 }
 0x18d   : > { %vm183_vm8 = vcmp.eq.s32.totalorder %v181_v25, 1 }
 0x18e   : > { %v185_v27 = vsel %vm183_vm8, %v65_v8, -inf }
 0x18f   : > { %v186_v28 = vmax.f32 %v184_v26, %v185_v27 }
 0x191   : > { %v187_v29 = vrot.slane %v186_v28, 4 }
 0x193   : > { %v188_v30 = vmax.f32 %v186_v28, %v187_v29 }
 0x195   : > { %v189_v31 = vrot.slane %v188_v30, 2 }
 0x197   : > { %v190_v32 = vmax.f32 %v188_v30, %v189_v31 }
 0x199   : > { %v191_v33 = vrot.slane %v190_v32, 1  ;;  %170 = sbr.rel (!%p167_p3) target bundleno = 262 (0x106), region = 68 }
 0x19b   : > { %v192_v35 = vmax.f32 %v190_v32, %v191_v33 }
 0x19d   : > { %v195_v36 = vmax.f32 %v194_v34, %v192_v35 }
 0x19f   : > { %196 = vst [vmem:[%s193_s20] sm:$0x1] %v195_v36 }
 0x1a0 PF:  { %v200_v37 = vld [vmem:[#allocation4] sm:$0xf]  ;;  %535 = vmatprep.subr.bf16.mxu1 %v689_v1  ;;  %v226_v38 = vld [vmem:[#allocation11] sm:$0xff]  ;;  %v227_v39 = vld [vmem:[#allocation11 + $0x8] sm:$0xff]  ;;  %559 = vmatprep.subr.bf16.mxu0 %v689_v1  ;;  %v693_v40 = vmov 0   ;;  %s694_s23 = smov [#allocation13]  }
 0x1a1   :  { %603 = vset.pattern.permute.xlu0 %v693_v40  ;;  %vm201_vm9 = vcmp.gt.f32.partialorder %v200_v37, 0.0  ;;  %v536_v41 = vpack.c.bf16 %v227_v39, %v226_v38  ;;  %v209_v42 = vld [vmem:[#allocation8] sm:$0xff]  ;;  %v210_v43 = vld [vmem:[#allocation8 + $0x8] sm:$0xff]  ;;  %v228_v44 = vld [vmem:[#allocation11 + $0x10] sm:$0xff]  ;;  %494 = vmatprep.mubr.msk.f32.mxu1 %vm691_vm1, %v690_v2  ;;  %s397_s24 = sshll.u32 %s694_s23, 4  ;;  %s398_s24 = int_to_ptr.vmem [resolvable:$true] %s397_s24 }
 0x1a2   :  { %v203_v45 = vsel %vm201_vm9, 1, %v693_v40  ;;  %v560_v46 = vpack.c.bf16 %v210_v43, %v209_v42  ;;  %v229_v47 = vld [vmem:[#allocation11 + $0x18] sm:$0xff]  ;;  %v211_v48 = vld [vmem:[#allocation8 + $0x10] sm:$0xff]  ;;  %529 = vmatprep.mubr.msk.f32.mxu0 %vm691_vm1, %v690_v2  ;;  %v230_v52 = vld [vmem:[#allocation11 + $0x20] sm:$0xff]  ;;  %s648_s25 = scalar_lea.vmem %s398_s24, 64  ;;  %p653_p5 = scmp.lt.s32.totalorder %s398_s24, %s398_s24 }
 0x1a3   :  { %v212_v49 = vld [vmem:[#allocation8 + $0x18] sm:$0xff]  ;;  %205 = vperm.xlu0 %603, %v203_v45   ;;  %537 = vmatpush3.bf16.msra.mxu1 %v536_v41  ;;  %v539_v50 = vpack.c.bf16 %v229_v47, %v228_v44  ;;  %v231_v53 = vld [vmem:[#allocation11 + $0x28] sm:$0xff]  ;;  %v213_v54 = vld [vmem:[#allocation8 + $0x20] sm:$0xff]  ;;  %p649_p4 = scmp.ne.s32.totalorder %s398_s24, %s648_s25  ;;  %p654_p6 = scmp.lt.s32.totalorder %s648_s25, %s648_s25 }
 0x1a4   :  { %561 = vmatpush3.bf16.msra.mxu0 %v560_v46  ;;  %538 = vmatprep.subr.bf16.mxu1 %v689_v1  ;;  %v563_v51 = vpack.c.bf16 %v212_v49, %v211_v48  ;;  %v214_v55 = vld [vmem:[#allocation8 + $0x28] sm:$0xff]  ;;  %v542_v56 = vpack.c.bf16 %v231_v53, %v230_v52  ;;  %v232_v58 = vld [vmem:[#allocation11 + $0x30] sm:$0xff]  ;;  %v233_v59 = vld [vmem:[#allocation11 + $0x38] sm:$0xff] }
 0x1a5   :  { %562 = vmatprep.subr.bf16.mxu0 %v689_v1  ;;  %v566_v57 = vpack.c.bf16 %v214_v55, %v213_v54  ;;  %v215_v60 = vld [vmem:[#allocation8 + $0x30] sm:$0xff]  ;;  %v216_v61 = vld [vmem:[#allocation8 + $0x38] sm:$0xff]  ;;  %v545_v62 = vpack.c.bf16 %v233_v59, %v232_v58  ;;  %v234_v0 = vld [vmem:[#allocation11 + $0x40] sm:$0xff]  ;;  %p655_p7 = por %p654_p6, %p653_p5 }
 0x1a6   :  { %v569_v63 = vpack.c.bf16 %v216_v61, %v215_v60  ;;  %v235_v2 = vld [vmem:[#allocation11 + $0x48] sm:$0xff]  ;;  %v217_v3 = vld [vmem:[#allocation8 + $0x40] sm:$0xff]  ;;  %v236_v7 = vld [vmem:[#allocation11 + $0x50] sm:$0xff] }
 0x1a7   :  { %540 = vmatpush3.bf16.msra.mxu1 %v539_v50  ;;  %v218_v4 = vld [vmem:[#allocation8 + $0x48] sm:$0xff]  ;;  %v548_v5 = vpack.c.bf16 %v235_v2, %v234_v0  ;;  %v237_v8 = vld [vmem:[#allocation11 + $0x58] sm:$0xff]  ;;  %v219_v9 = vld [vmem:[#allocation8 + $0x50] sm:$0xff]  ;;  %p656_p8 = pnand %p655_p7, %p649_p4 }
 0x1a8   :  { %564 = vmatpush3.bf16.msra.mxu0 %v563_v51  ;;  %541 = vmatprep.subr.bf16.mxu1 %v689_v1  ;;  %v572_v6 = vpack.c.bf16 %v218_v4, %v217_v3  ;;  %v220_v10 = vld [vmem:[#allocation8 + $0x58] sm:$0xff]  ;;  %v551_v11 = vpack.c.bf16 %v237_v8, %v236_v7  ;;  %v238_v13 = vld [vmem:[#allocation11 + $0x60] sm:$0xff]  ;;  %v239_v14 = vld [vmem:[#allocation11 + $0x68] sm:$0xff] }
 0x1a9   :  { %565 = vmatprep.subr.bf16.mxu0 %v689_v1  ;;  %v575_v12 = vpack.c.bf16 %v220_v10, %v219_v9  ;;  %v221_v15 = vld [vmem:[#allocation8 + $0x60] sm:$0xff]  ;;  %v222_v16 = vld [vmem:[#allocation8 + $0x68] sm:$0xff]  ;;  %v554_v17 = vpack.c.bf16 %v239_v14, %v238_v13  ;;  %v240_v19 = vld [vmem:[#allocation11 + $0x70] sm:$0xff] }
 0x1aa   :  { %v578_v18 = vpack.c.bf16 %v222_v16, %v221_v15  ;;  %v241_v20 = vld [vmem:[#allocation11 + $0x78] sm:$0xff]  ;;  %v223_v21 = vld [vmem:[#allocation8 + $0x70] sm:$0xff] }
 0x1ab   :  { %543 = vmatpush3.bf16.msra.mxu1 %v542_v56  ;;  %v224_v22 = vld [vmem:[#allocation8 + $0x78] sm:$0xff]  ;;  %v557_v23 = vpack.c.bf16 %v241_v20, %v240_v19  ;;  %v202_v26 = vld [vmem:[#allocation2] sm:$0xf] }
 0x1ac   :  { %567 = vmatpush3.bf16.msra.mxu0 %v566_v57  ;;  %544 = vmatprep.subr.bf16.mxu1 %v689_v1  ;;  %v581_v24 = vpack.c.bf16 %v224_v22, %v223_v21  ;;  %v225_v25 = vld [vmem:[#allocation3] sm:$0xf]  ;;  %v417_v31 = vld [vmem:[%s851_s7] ss:$0 sm:$0xff] }
 0x1ad   :  { %568 = vmatprep.subr.bf16.mxu0 %v689_v1 }
 0x1af   :  { %546 = vmatpush3.bf16.msra.mxu1 %v545_v62 }
 0x1b0   :  { %570 = vmatpush3.bf16.msra.mxu0 %v569_v63  ;;  %547 = vmatprep.subr.bf16.mxu1 %v689_v1 }
 0x1b1   :  { %571 = vmatprep.subr.bf16.mxu0 %v689_v1 }
 0x1b3   :  { %549 = vmatpush3.bf16.msra.mxu1 %v548_v5 }
 0x1b4   :  { %573 = vmatpush3.bf16.msra.mxu0 %v572_v6  ;;  %550 = vmatprep.subr.bf16.mxu1 %v689_v1 }
 0x1b5   :  { %574 = vmatprep.subr.bf16.mxu0 %v689_v1 }
 0x1b7   :  { %552 = vmatpush3.bf16.msra.mxu1 %v551_v11 }
 0x1b8   :  { %576 = vmatpush3.bf16.msra.mxu0 %v575_v12  ;;  %553 = vmatprep.subr.bf16.mxu1 %v689_v1 }
 0x1b9   :  { %577 = vmatprep.subr.bf16.mxu0 %v689_v1 }
 0x1bb   :  { %555 = vmatpush3.bf16.msra.mxu1 %v554_v17 }
 0x1bc   :  { %579 = vmatpush3.bf16.msra.mxu0 %v578_v18  ;;  %556 = vmatprep.subr.bf16.mxu1 %v689_v1 }
 0x1bd   :  { %580 = vmatprep.subr.bf16.mxu0 %v689_v1 }
 0x1bf   :  { %558 = vmatpush3.bf16.msra.mxu1 %v557_v23 }
 0x1c0   :  { %582 = vmatpush3.bf16.msra.mxu0 %v581_v24 }
 0x1c2   :  { %495 = vmatmul.mubr.f32.vlgmr.msra.gmra.mrb[0].mxu1 %v225_v25 }
 0x222   :  { %v206_v27 = vpop.permute.xlu0 %205 }
 0x223   :  { %vm207_vm10 = vcmp.eq.s32.totalorder %v206_v27, 1 }
 0x224   :  { %530 = vmatmul.mubr.msk.f32.vlgmr.msra.gmra.mrb[2].mxu0 %vm207_vm10, %v202_v26 }
 0x295   :  { %v308_v28 = vpop.f32.mrb[0].mxu1 }
 0x296   :  { %v496_v29 = vpop.f32.mrb[1].mxu1 }
 0x2f7   :  { %v378_v30 = vpop.f32.mrb[2].mxu0 }
 0x2f8   :  { %v379_v32 = vadd.f32 %v378_v30, %v308_v28  ;;  %v531_v33 = vpop.f32.mrb[3].mxu0 }
 0x2fa   :  { %v389_v1 = vadd.f32 %v417_v31, %v379_v32 }
 0x2fc   :  { %390 = vst [vmem:[#allocation13] sm:$0xf] %v389_v1 }
 0x2fd   :  { %659 = shalt.err (!%p656_p8)
}
 0x2fe   :  { %s660_s29 = scalar_lea.hbm %s852_s8, 64 }
 0x2ff   :  { %p661_p9 = scmp.ne.s32.totalorder %s852_s8, %s660_s29  ;;  %p664_p10 = scmp.lt.u32.totalorder %s660_s29, %s852_s8 }
 0x301   :  { %p666_p11 = pnand %p664_p10, %p661_p9 }
 0x303   :  { %669 = shalt.err (!%p666_p11)
}
 0x304   :  { %400 = dma.vmem_to_hbm [thread:$0]  %s398_s24, 64, %s852_s8, [#allocation10]  }
 0x305   :  { %678 = dma.done.wait [#allocation10], 64  }
 0x306   :  { %679 = vsyncadd [#allocation10], 4294967232 }
 0x307   :  { %404 = vsyncpa [#allocation9], 1 }
 0x308   :  { %405 = vsyncpa [#allocation12], 1 }
 0x309   :  { %406 = vsyncpa [#allocation10], 1 }

</bundles_post_ra>
